<compile_context>
chip_gen: v7x
topology: tpu7x:2x2x1
jax: 0.10.0
libtpu: 0.0.40
codegen_flags: <defaults>
</compile_context>

<pallas_src>
import functools

import jax
import jax.numpy as jnp
from jax import lax
from jax.experimental import pallas as pl
from jax.experimental.pallas import tpu as pltpu


def _round_up(v, m):
    return ((v + m - 1) // m) * m


def _gat_kernel(alpha, norm_idx, n_pad, heads,
                xT_ref, wT_ref, awT_ref, edge_ref,
                attn_ref, wxT_ref,
                score_sc, m_sc, den_sc, e_sc):
    """Grid = (B, phase, E_tiles).  phase 0: accumulate; phase 1: emit attention."""
    phase = pl.program_id(1)
    t = pl.program_id(2)
    tE = attn_ref.shape[2]
    off = pl.multiple_of(t * tE, 128)

    # ---- per-batch init: wx projection + per-node scores + accumulator reset ----
    @pl.when(jnp.logical_and(phase == 0, t == 0))
    def _init():
        xT = xT_ref[0]                                                   # (Fin, N_pad)
        wxT = jnp.dot(wT_ref[...], xT, preferred_element_type=jnp.float32)   # (A, N_pad)
        wxT_ref[0] = wxT.astype(wxT_ref.dtype)
        # per-node scores for src/dst, via a pre-folded (2H, Fin) projection of x^T
        s2h = jnp.dot(awT_ref[...], xT, preferred_element_type=jnp.float32)  # (2H, N_pad)
        score_sc[...] = jnp.concatenate([s2h[:heads], s2h[heads:]], axis=1)  # (H, 2N_pad)
        m_sc[...] = jnp.full_like(m_sc, -1e30)
        den_sc[...] = jnp.zeros_like(den_sc)

    # ---- phase 0: build incidence tile, gather scores, accumulate denominator ----
    @pl.when(phase == 0)
    def _accumulate():
        ed = edge_ref[0]                                                 # (2, tE) int32
        row2 = lax.broadcasted_iota(jnp.int32, (2 * n_pad, tE), 0)
        src = jnp.broadcast_to(ed[0:1, :], (2 * n_pad, tE))
        dst = jnp.broadcast_to(ed[1:2, :], (2 * n_pad, tE))
        target = jnp.where(row2 < n_pad, src, dst + n_pad)
        S = (row2 == target).astype(jnp.float32)   # (2N_pad, tE) stacked one-hot, built in VMEM

        # One fused gather matmul over the stacked (2N_pad, tE) incidence.
        e = jnp.dot(score_sc[...], S, preferred_element_type=jnp.float32)    # (H, tE)
        e = jnp.where(e > 0.0, e, alpha * e)                                  # LeakyReLU
        e_sc[:, pl.ds(off, tE)] = e

        # softmax-group half of the incidence (static slice at a sublane boundary)
        sg = S[:n_pad] if norm_idx == 0 else S[n_pad:]                        # (N_pad, tE)

        # online (running-max) accumulation of the per-group denominator
        m_new = jnp.maximum(m_sc[...], jnp.max(e, axis=1, keepdims=True))     # (H, 1)
        scale = jnp.exp(m_sc[...] - m_new)
        num = jnp.exp(e - m_new)                                              # (H, tE)
        den_sc[...] = den_sc[...] * scale + lax.dot_general(
            num, sg, (((1,), (1,)), ((), ())), preferred_element_type=jnp.float32)
        m_sc[...] = m_new

    # ---- phase 1: group-level reciprocal, then emit normalized attention tiles ----
    @pl.when(jnp.logical_and(phase == 1, t == 0))
    def _finalize_den():
        den_sc[...] = pl.reciprocal(den_sc[...] + 1e-16)                      # (H, N_pad)

    @pl.when(phase == 1)
    def _emit():
        grp = edge_ref[0, norm_idx:norm_idx + 1, :]                           # (1, tE)
        row_n = lax.broadcasted_iota(jnp.int32, (n_pad, tE), 0)
        sg = (row_n == jnp.broadcast_to(grp, (n_pad, tE))).astype(jnp.float32)

        num = jnp.exp(e_sc[:, pl.ds(off, tE)] - m_sc[...])                    # (H, tE)
        inv = jnp.dot(den_sc[...], sg, preferred_element_type=jnp.float32)    # gather 1/den
        attn_ref[0] = (num * inv).astype(attn_ref.dtype)


def sp_graph_attention(x, edge, W, a, *, heads, d_k, alpha, norm_idx, edge_tile=128):
    B, N, Fin = x.shape
    A = W.shape[1]
    E = edge.shape[2]
    assert norm_idx in (0, 1)

    tE = max(128, (int(edge_tile) // 128) * 128)
    N_pad = _round_up(N, 8)
    E_pad = _round_up(E, tE)
    nE = E_pad // tE

    # Fold the "a" vector into per-head projections, then pre-fold through W^T so the
    # per-node scores are a single small matmul against x^T (independent of wx).
    idx = jnp.arange(A)
    hh = idx // d_k
    kk = idx % d_k
    a_flat = a.reshape(2 * d_k).astype(jnp.float32)
    a_src = jnp.zeros((heads, A), jnp.float32).at[hh, idx].set(a_flat[kk])
    a_dst = jnp.zeros((heads, A), jnp.float32).at[hh, idx].set(a_flat[d_k + kk])
    a_cat = jnp.concatenate([a_src, a_dst], axis=0)                     # (2H, A)
    aWT = a_cat @ jnp.transpose(W.astype(jnp.float32))                  # (2H, Fin)

    # Node-padded, transposed x; padded nodes are all-zero and are sliced off.
    x_p = jnp.pad(x.astype(jnp.float32), ((0, 0), (0, N_pad - N), (0, 0)))
    xT = jnp.transpose(x_p, (0, 2, 1))                                  # (B, Fin, N_pad)
    WT = jnp.transpose(W.astype(jnp.float32))                           # (A, Fin)

    # Edge-padded indices: sentinel N_pad matches no node row, so padded edges cannot
    # contribute to any real softmax group.
    edge_p = jnp.pad(edge.astype(jnp.int32), ((0, 0), (0, 0), (0, E_pad - E)),
                     constant_values=N_pad)                             # (B, 2, E_pad)

    kernel = functools.partial(_gat_kernel, float(alpha), int(norm_idx), N_pad, heads)
    attn_t, wxT_out = pl.pallas_call(
        kernel,
        out_shape=(jax.ShapeDtypeStruct((B, heads, E_pad), jnp.float32),
                   jax.ShapeDtypeStruct((B, A, N_pad), jnp.float32)),
        grid=(B, 2, nE),
        in_specs=[
            pl.BlockSpec((1, Fin, N_pad), lambda b, p, t: (b, 0, 0)),
            pl.BlockSpec((A, Fin), lambda b, p, t: (0, 0)),
            pl.BlockSpec((2 * heads, Fin), lambda b, p, t: (0, 0)),
            pl.BlockSpec((1, 2, tE), lambda b, p, t: (b, 0, t)),
        ],
        out_specs=(pl.BlockSpec((1, heads, tE), lambda b, p, t: (b, 0, t)),
                   pl.BlockSpec((1, A, N_pad), lambda b, p, t: (b, 0, 0))),
        scratch_shapes=[
            pltpu.VMEM((heads, 2 * N_pad), jnp.float32),   # per-node src/dst scores
            pltpu.VMEM((heads, 1), jnp.float32),           # running per-head max
            pltpu.VMEM((heads, N_pad), jnp.float32),       # group denominator / its reciprocal
            pltpu.VMEM((heads, E_pad), jnp.float32),       # stashed per-edge logits
        ],
        compiler_params=pltpu.CompilerParams(
            dimension_semantics=("parallel", "arbitrary", "arbitrary"),
            vmem_limit_bytes=64 * 1024 * 1024),
    )(xT, WT, aWT, edge_p)

    # Back to the module's layouts: attention (B, E, heads), wx (B, N, A).
    attn = jnp.transpose(attn_t[:, :, :E], (0, 2, 1))
    wx = jnp.transpose(wxT_out[:, :, :N], (0, 2, 1))
    return attn, wx


def reference(x, edge, W, a, *, heads, d_k, alpha, norm_idx):
    """Pure-JAX transcription of the PyTorch forward (for verification)."""
    B, N, Fin = x.shape
    wx = x @ W                                                  # (B, N, A)
    h = wx.reshape(B, N, heads, d_k).transpose(0, 1, 3, 2)      # (B, N, d_k, heads)
    src = edge[:, 0, :]
    dst = edge[:, 1, :]
    b_idx = jnp.arange(B)[:, None]
    h_src = h[b_idx, src]                                       # (B, E, d_k, heads)
    h_dst = h[b_idx, dst]                                       # (B, E, d_k, heads)
    edge_h = jnp.concatenate([h_src, h_dst], axis=2)            # (B, E, 2*d_k, heads)
    a4 = a.reshape(1, 1, 2 * d_k, 1)
    e = jnp.sum(a4 * edge_h, axis=2)                            # (B, E, heads)
    e = jnp.where(e > 0, e, alpha * e)
    grp = edge[:, norm_idx, :]                                  # (B, E)
    oh = jax.nn.one_hot(grp, N, dtype=jnp.float32)              # (B, E, N)
    masked = jnp.where(oh[..., None] > 0.5, e[:, :, None, :], -1e30)
    gmax = jnp.max(masked, axis=1)                              # (B, N, heads)
    mpe = jnp.take_along_axis(gmax, grp[..., None], axis=1)     # (B, E, heads)
    num = jnp.exp(e - mpe)
    den_g = jnp.einsum('ben,beh->bnh', oh, num)                 # (B, N, heads)
    den = jnp.take_along_axis(den_g, grp[..., None], axis=1)    # (B, E, heads)
    attn = num / (den + 1e-16)
    return attn, wx


if __name__ == "__main__":
    # Small deterministic problem:
    #   in_features = 8, attention_dim = 32, heads = 4 (d_k = 8), nodes N = 16,
    #   edges E = 200 (so the kernel exercises 2 edge tiles + lane padding).
    B, N, Fin, heads, A, E = 2, 16, 8, 4, 32, 200
    d_k = A // heads
    alpha = 0.2            # opt['leaky_relu_slope']

    key = jax.random.PRNGKey(0)
    k1, k2, k3, k4 = jax.random.split(key, 4)
    x = jax.random.normal(k1, (B, N, Fin), jnp.float32)
    edge = jax.random.randint(k2, (B, 2, E), 0, N, jnp.int32)

    # xavier_normal_ (gain = 1.414), done deterministically in-script.
    std_W = 1.414 * (2.0 / (Fin + A)) ** 0.5
    W = std_W * jax.random.normal(k3, (Fin, A), jnp.float32)
    std_a = 1.414 * (2.0 / (2 * d_k + 1)) ** 0.5
    a = std_a * jax.random.normal(k4, (1, 2 * d_k, 1, 1), jnp.float32)

    ok = True
    for norm_idx in (1, 0):   # opt['attention_norm_idx']
        attn, wx = sp_graph_attention(x, edge, W, a, heads=heads, d_k=d_k,
                                      alpha=alpha, norm_idx=norm_idx)
        jax.block_until_ready((attn, wx))

        ref_attn, ref_wx = reference(x, edge, W, a, heads=heads, d_k=d_k,
                                     alpha=alpha, norm_idx=norm_idx)
        assert attn.shape == (B, E, heads) and wx.shape == (B, N, A)
        assert jnp.allclose(wx, ref_wx, atol=1e-4, rtol=1e-4)
        assert jnp.allclose(attn, ref_attn, atol=1e-4, rtol=1e-4)
        ok = ok and True

    if ok:
        print("KERNEL_OK")
</pallas_src>

<mosaic_0001>
module attributes {stable_mosaic.version = 11 : i64} {
  func.func @_gat_kernel(%arg0: i32, %arg1: i32, %arg2: i32, %arg3: memref<1x8x16xf32, #tpu.memory_space<vmem>>, %arg4: memref<32x8xf32, #tpu.memory_space<vmem>>, %arg5: memref<8x8xf32, #tpu.memory_space<vmem>>, %arg6: memref<1x2x128xi32, #tpu.memory_space<vmem>>, %arg7: memref<1x4x128xf32, #tpu.memory_space<vmem>>, %arg8: memref<1x32x16xf32, #tpu.memory_space<vmem>>, %arg9: memref<4x32xf32, #tpu.memory_space<vmem>>, %arg10: memref<4x1xf32, #tpu.memory_space<vmem>>, %arg11: memref<4x16xf32, #tpu.memory_space<vmem>>, %arg12: memref<4x256xf32, #tpu.memory_space<vmem>>) attributes {dimension_semantics = [#tpu.dimension_semantics<parallel>, #tpu.dimension_semantics<arbitrary>, #tpu.dimension_semantics<arbitrary>], iteration_bounds = array<i64: 2, 2, 2>, scalar_prefetch = 0 : i64, scratch_operands = 4 : i64, tpu.core_type = #tpu.core_type<tc>, window_params = [{transform_indices = @transform_0, window_bounds = array<i64: 1, 8, 16>}, {pipeline_mode = #tpu.pipeline_mode<synchronous>, transform_indices = @transform_1, window_bounds = array<i64: 32, 8>}, {pipeline_mode = #tpu.pipeline_mode<synchronous>, transform_indices = @transform_2, window_bounds = array<i64: 8, 8>}, {transform_indices = @transform_3, window_bounds = array<i64: 1, 2, 128>}, {transform_indices = @transform_4, window_bounds = array<i64: 1, 4, 128>}, {transform_indices = @transform_5, window_bounds = array<i64: 1, 32, 16>}]} {
    %c128_i32 = arith.constant 128 : i32
    %0 = arith.muli %arg2, %c128_i32 : i32
    %1 = tpu.assume_multiple %0, 128 : i32
    %c0_i32 = arith.constant 0 : i32
    %2 = arith.cmpi eq, %arg1, %c0_i32 : i32
    %c0_i32_0 = arith.constant 0 : i32
    %3 = arith.cmpi eq, %arg2, %c0_i32_0 : i32
    %4 = arith.andi %2, %3 : i1
    %5 = arith.extui %4 : i1 to i32
    %c0_i32_1 = arith.constant 0 : i32
    %6 = arith.cmpi ne, %5, %c0_i32_1 : i32
    scf.if %6 {
      %c0 = arith.constant 0 : index
      %c0_8 = arith.constant 0 : index
      %c0_9 = arith.constant 0 : index
      %18 = vector.load %arg3[%c0, %c0_8, %c0_9] : memref<1x8x16xf32, #tpu.memory_space<vmem>>, vector<1x8x16xf32>
      %19 = vector.shape_cast %18 : vector<1x8x16xf32> to vector<8x16xf32>
      %c0_10 = arith.constant 0 : index
      %c0_11 = arith.constant 0 : index
      %20 = vector.load %arg4[%c0_10, %c0_11] : memref<32x8xf32, #tpu.memory_space<vmem>>, vector<32x8xf32>
      %cst = arith.constant dense<0.000000e+00> : vector<32x16xf32>
      %21 = tpu.matmul %20, %19, %cst {dimension_numbers = #tpu.dot_dimension_numbers<[1], [0], [0], [1], [0, 0, 1, 1], [], []>} : vector<32x8xf32>, vector<8x16xf32>, vector<32x16xf32> -> vector<32x16xf32>
      %c0_12 = arith.constant 0 : index
      %c0_13 = arith.constant 0 : index
      %c0_14 = arith.constant 0 : index
      %22 = vector.load %arg8[%c0_12, %c0_13, %c0_14] : memref<1x32x16xf32, #tpu.memory_space<vmem>>, vector<1x32x16xf32>
      %23 = vector.shape_cast %22 : vector<1x32x16xf32> to vector<32x16xf32>
      %24 = vector.shape_cast %21 : vector<32x16xf32> to vector<1x32x16xf32>
      tpu.vector_store %arg8[%c0_12, %c0_13, %c0_14], %24 {strides = array<i32>} : memref<1x32x16xf32, #tpu.memory_space<vmem>>, vector<1x32x16xf32>,
      %c0_15 = arith.constant 0 : index
      %c0_16 = arith.constant 0 : index
      %25 = vector.load %arg5[%c0_15, %c0_16] : memref<8x8xf32, #tpu.memory_space<vmem>>, vector<8x8xf32>
      %cst_17 = arith.constant dense<0.000000e+00> : vector<8x16xf32>
      %26 = tpu.matmul %25, %19, %cst_17 {dimension_numbers = #tpu.dot_dimension_numbers<[1], [0], [0], [1], [0, 0, 1, 1], [], []>} : vector<8x8xf32>, vector<8x16xf32>, vector<8x16xf32> -> vector<8x16xf32>
      %27 = vector.extract_strided_slice %26 {offsets = [0, 0], sizes = [4, 16], strides = [1, 1]} : vector<8x16xf32> to vector<4x16xf32>
      %28 = vector.extract_strided_slice %26 {offsets = [4, 0], sizes = [4, 16], strides = [1, 1]} : vector<8x16xf32> to vector<4x16xf32>
      %29 = tpu.concatenate %27, %28 in 1 : vector<4x16xf32>, vector<4x16xf32> -> vector<4x32xf32>
      %c0_18 = arith.constant 0 : index
      %c0_19 = arith.constant 0 : index
      %30 = vector.load %arg9[%c0_18, %c0_19] : memref<4x32xf32, #tpu.memory_space<vmem>>, vector<4x32xf32>
      tpu.vector_store %arg9[%c0_18, %c0_19], %29 {strides = array<i32>} : memref<4x32xf32, #tpu.memory_space<vmem>>, vector<4x32xf32>,
      %cst_20 = arith.constant -1.000000e+30 : f32
      %31 = vector.broadcast %cst_20 : f32 to vector<4x1xf32>
      %c0_21 = arith.constant 0 : index
      %c0_22 = arith.constant 0 : index
      %32 = vector.load %arg10[%c0_21, %c0_22] : memref<4x1xf32, #tpu.memory_space<vmem>>, vector<4x1xf32>
      tpu.vector_store %arg10[%c0_21, %c0_22], %31 {strides = array<i32>} : memref<4x1xf32, #tpu.memory_space<vmem>>, vector<4x1xf32>,
      %cst_23 = arith.constant 0.000000e+00 : f32
      %33 = vector.broadcast %cst_23 : f32 to vector<4x16xf32>
      %c0_24 = arith.constant 0 : index
      %c0_25 = arith.constant 0 : index
      %34 = vector.load %arg11[%c0_24, %c0_25] : memref<4x16xf32, #tpu.memory_space<vmem>>, vector<4x16xf32>
      tpu.vector_store %arg11[%c0_24, %c0_25], %33 {strides = array<i32>} : memref<4x16xf32, #tpu.memory_space<vmem>>, vector<4x16xf32>,
    } else {
    }
    %c0_i32_2 = arith.constant 0 : i32
    %7 = arith.cmpi eq, %arg1, %c0_i32_2 : i32
    %8 = arith.extui %7 : i1 to i32
    %c0_i32_3 = arith.constant 0 : i32
    %9 = arith.cmpi ne, %8, %c0_i32_3 : i32
    scf.if %9 {
      %c0 = arith.constant 0 : index
      %c0_8 = arith.constant 0 : index
      %c0_9 = arith.constant 0 : index
      %18 = vector.load %arg6[%c0, %c0_8, %c0_9] : memref<1x2x128xi32, #tpu.memory_space<vmem>>, vector<1x2x128xi32>
      %19 = vector.shape_cast %18 : vector<1x2x128xi32> to vector<2x128xi32>
      %20 = tpu.iota {dimensions = array<i32: 0>} : vector<32x128xi32>
      %21 = vector.extract_strided_slice %19 {offsets = [0, 0], sizes = [1, 128], strides = [1, 1]} : vector<2x128xi32> to vector<1x128xi32>
      %22 = vector.shape_cast %21 : vector<1x128xi32> to vector<1x128xi32>
      %23 = vector.broadcast %22 : vector<1x128xi32> to vector<32x128xi32>
      %24 = vector.extract_strided_slice %19 {offsets = [1, 0], sizes = [1, 128], strides = [1, 1]} : vector<2x128xi32> to vector<1x128xi32>
      %25 = vector.shape_cast %24 : vector<1x128xi32> to vector<1x128xi32>
      %26 = vector.broadcast %25 : vector<1x128xi32> to vector<32x128xi32>
      %c16_i32 = arith.constant 16 : i32
      %27 = vector.broadcast %c16_i32 : i32 to vector<32x128xi32>
      %28 = arith.cmpi slt, %20, %27 : vector<32x128xi32>
      %c16_i32_10 = arith.constant 16 : i32
      %29 = vector.broadcast %c16_i32_10 : i32 to vector<32x128xi32>
      %30 = arith.addi %26, %29 : vector<32x128xi32>
      %31 = arith.select %28, %23, %30 : vector<32x128xi1>, vector<32x128xi32>
      %32 = arith.cmpi eq, %20, %31 : vector<32x128xi32>
      %33 = arith.extui %32 : vector<32x128xi1> to vector<32x128xi32>
      %34 = arith.sitofp %33 : vector<32x128xi32> to vector<32x128xf32>
      %c0_11 = arith.constant 0 : index
      %c0_12 = arith.constant 0 : index
      %35 = vector.load %arg9[%c0_11, %c0_12] : memref<4x32xf32, #tpu.memory_space<vmem>>, vector<4x32xf32>
      %cst = arith.constant dense<0.000000e+00> : vector<4x128xf32>
      %36 = tpu.matmul %35, %34, %cst {dimension_numbers = #tpu.dot_dimension_numbers<[1], [0], [0], [1], [0, 0, 1, 1], [], []>} : vector<4x32xf32>, vector<32x128xf32>, vector<4x128xf32> -> vector<4x128xf32>
      %cst_13 = arith.constant 0.000000e+00 : f32
      %37 = vector.broadcast %cst_13 : f32 to vector<4x128xf32>
      %38 = arith.cmpf ogt, %36, %37 : vector<4x128xf32>
      %cst_14 = arith.constant 2.000000e-01 : f32
      %39 = vector.broadcast %cst_14 : f32 to vector<4x128xf32>
      %40 = arith.mulf %39, %36 : vector<4x128xf32>
      %41 = arith.select %38, %36, %40 : vector<4x128xi1>, vector<4x128xf32>
      %c0_15 = arith.constant 0 : index
      %42 = arith.index_cast %1 : i32 to index
      %43 = vector.load %arg12[%c0_15, %42] : memref<4x256xf32, #tpu.memory_space<vmem>>, vector<4x128xf32>
      tpu.vector_store %arg12[%c0_15, %42], %41 {strides = array<i32>} : memref<4x256xf32, #tpu.memory_space<vmem>>, vector<4x128xf32>,
      %44 = vector.extract_strided_slice %34 {offsets = [16, 0], sizes = [16, 128], strides = [1, 1]} : vector<32x128xf32> to vector<16x128xf32>
      %c0_16 = arith.constant 0 : index
      %c0_17 = arith.constant 0 : index
      %45 = vector.load %arg10[%c0_16, %c0_17] : memref<4x1xf32, #tpu.memory_space<vmem>>, vector<4x1xf32>
      %cst_18 = arith.constant dense<0xFF800000> : vector<4xf32>
      %46 = vector.multi_reduction <maximumf>, %41, %cst_18 [1] : vector<4x128xf32> to vector<4xf32>
      %47 = vector.shape_cast %46 : vector<4xf32> to vector<4x1xf32>
      %48 = arith.maximumf %45, %47 : vector<4x1xf32>
      %c0_19 = arith.constant 0 : index
      %c0_20 = arith.constant 0 : index
      %49 = vector.load %arg10[%c0_19, %c0_20] : memref<4x1xf32, #tpu.memory_space<vmem>>, vector<4x1xf32>
      %50 = arith.subf %49, %48 : vector<4x1xf32>
      %51 = math.exp %50 : vector<4x1xf32>
      %52 = vector.broadcast %48 : vector<4x1xf32> to vector<4x128xf32>
      %53 = arith.subf %41, %52 : vector<4x128xf32>
      %54 = math.exp %53 : vector<4x128xf32>
      %c0_21 = arith.constant 0 : index
      %c0_22 = arith.constant 0 : index
      %55 = vector.load %arg11[%c0_21, %c0_22] : memref<4x16xf32, #tpu.memory_space<vmem>>, vector<4x16xf32>
      %56 = vector.broadcast %51 : vector<4x1xf32> to vector<4x16xf32>
      %57 = arith.mulf %55, %56 : vector<4x16xf32>
      %cst_23 = arith.constant dense<0.000000e+00> : vector<4x16xf32>
      %58 = tpu.matmul %54, %44, %cst_23 {dimension_numbers = #tpu.dot_dimension_numbers<[1], [1], [0], [0], [0, 0, 1, 0], [], []>} : vector<4x128xf32>, vector<16x128xf32>, vector<4x16xf32> -> vector<4x16xf32>
      %59 = arith.addf %57, %58 : vector<4x16xf32>
      %c0_24 = arith.constant 0 : index
      %c0_25 = arith.constant 0 : index
      %60 = vector.load %arg11[%c0_24, %c0_25] : memref<4x16xf32, #tpu.memory_space<vmem>>, vector<4x16xf32>
      tpu.vector_store %arg11[%c0_24, %c0_25], %59 {strides = array<i32>} : memref<4x16xf32, #tpu.memory_space<vmem>>, vector<4x16xf32>,
      %c0_26 = arith.constant 0 : index
      %c0_27 = arith.constant 0 : index
      %61 = vector.load %arg10[%c0_26, %c0_27] : memref<4x1xf32, #tpu.memory_space<vmem>>, vector<4x1xf32>
      tpu.vector_store %arg10[%c0_26, %c0_27], %48 {strides = array<i32>} : memref<4x1xf32, #tpu.memory_space<vmem>>, vector<4x1xf32>,
    } else {
    }
    %c1_i32 = arith.constant 1 : i32
    %10 = arith.cmpi eq, %arg1, %c1_i32 : i32
    %c0_i32_4 = arith.constant 0 : i32
    %11 = arith.cmpi eq, %arg2, %c0_i32_4 : i32
    %12 = arith.andi %10, %11 : i1
    %13 = arith.extui %12 : i1 to i32
    %c0_i32_5 = arith.constant 0 : i32
    %14 = arith.cmpi ne, %13, %c0_i32_5 : i32
    scf.if %14 {
      %c0 = arith.constant 0 : index
      %c0_8 = arith.constant 0 : index
      %18 = vector.load %arg11[%c0, %c0_8] : memref<4x16xf32, #tpu.memory_space<vmem>>, vector<4x16xf32>
      %cst = arith.constant 1.000000e-16 : f32
      %19 = vector.broadcast %cst : f32 to vector<4x16xf32>
      %20 = arith.addf %18, %19 : vector<4x16xf32>
      %21 = tpu.reciprocal %20 : vector<4x16xf32> -> vector<4x16xf32>
      %c0_9 = arith.constant 0 : index
      %c0_10 = arith.constant 0 : index
      %22 = vector.load %arg11[%c0_9, %c0_10] : memref<4x16xf32, #tpu.memory_space<vmem>>, vector<4x16xf32>
      tpu.vector_store %arg11[%c0_9, %c0_10], %21 {strides = array<i32>} : memref<4x16xf32, #tpu.memory_space<vmem>>, vector<4x16xf32>,
    } else {
    }
    %c1_i32_6 = arith.constant 1 : i32
    %15 = arith.cmpi eq, %arg1, %c1_i32_6 : i32
    %16 = arith.extui %15 : i1 to i32
    %c0_i32_7 = arith.constant 0 : i32
    %17 = arith.cmpi ne, %16, %c0_i32_7 : i32
    scf.if %17 {
      %c0 = arith.constant 0 : index
      %c1 = arith.constant 1 : index
      %c0_8 = arith.constant 0 : index
      %18 = vector.load %arg6[%c0, %c1, %c0_8] : memref<1x2x128xi32, #tpu.memory_space<vmem>>, vector<1x1x128xi32>
      %19 = vector.shape_cast %18 : vector<1x1x128xi32> to vector<1x128xi32>
      %20 = tpu.iota {dimensions = array<i32: 0>} : vector<16x128xi32>
      %21 = vector.shape_cast %19 : vector<1x128xi32> to vector<1x128xi32>
      %22 = vector.broadcast %21 : vector<1x128xi32> to vector<16x128xi32>
      %23 = arith.cmpi eq, %20, %22 : vector<16x128xi32>
      %24 = arith.extui %23 : vector<16x128xi1> to vector<16x128xi32>
      %25 = arith.sitofp %24 : vector<16x128xi32> to vector<16x128xf32>
      %c0_9 = arith.constant 0 : index
      %26 = arith.index_cast %1 : i32 to index
      %27 = vector.load %arg12[%c0_9, %26] : memref<4x256xf32, #tpu.memory_space<vmem>>, vector<4x128xf32>
      %c0_10 = arith.constant 0 : index
      %c0_11 = arith.constant 0 : index
      %28 = vector.load %arg10[%c0_10, %c0_11] : memref<4x1xf32, #tpu.memory_space<vmem>>, vector<4x1xf32>
      %29 = vector.broadcast %28 : vector<4x1xf32> to vector<4x128xf32>
      %30 = arith.subf %27, %29 : vector<4x128xf32>
      %31 = math.exp %30 : vector<4x128xf32>
      %c0_12 = arith.constant 0 : index
      %c0_13 = arith.constant 0 : index
      %32 = vector.load %arg11[%c0_12, %c0_13] : memref<4x16xf32, #tpu.memory_space<vmem>>, vector<4x16xf32>
      %cst = arith.constant dense<0.000000e+00> : vector<4x128xf32>
      %33 = tpu.matmul %32, %25, %cst {dimension_numbers = #tpu.dot_dimension_numbers<[1], [0], [0], [1], [0, 0, 1, 1], [], []>} : vector<4x16xf32>, vector<16x128xf32>, vector<4x128xf32> -> vector<4x128xf32>
      %34 = arith.mulf %31, %33 : vector<4x128xf32>
      %c0_14 = arith.constant 0 : index
      %c0_15 = arith.constant 0 : index
      %c0_16 = arith.constant 0 : index
      %35 = vector.load %arg7[%c0_14, %c0_15, %c0_16] : memref<1x4x128xf32, #tpu.memory_space<vmem>>, vector<1x4x128xf32>
      %36 = vector.shape_cast %35 : vector<1x4x128xf32> to vector<4x128xf32>
      %37 = vector.shape_cast %34 : vector<4x128xf32> to vector<1x4x128xf32>
      tpu.vector_store %arg7[%c0_14, %c0_15, %c0_16], %37 {strides = array<i32>} : memref<1x4x128xf32, #tpu.memory_space<vmem>>, vector<1x4x128xf32>,
    } else {
    }
    return
  }
  func.func @transform_0(%arg0: i32, %arg1: i32, %arg2: i32) -> (i32, i32, i32) {
    %c0_i32 = arith.constant 0 : i32
    %c0_i32_0 = arith.constant 0 : i32
    %c0_i32_1 = arith.constant 0 : i32
    return %arg0, %c0_i32, %c0_i32_0 : i32, i32, i32
  }
  func.func @transform_1(%arg0: i32, %arg1: i32, %arg2: i32) -> (i32, i32) {
    %c0_i32 = arith.constant 0 : i32
    %c0_i32_0 = arith.constant 0 : i32
    %c0_i32_1 = arith.constant 0 : i32
    return %c0_i32, %c0_i32_0 : i32, i32
  }
  func.func @transform_2(%arg0: i32, %arg1: i32, %arg2: i32) -> (i32, i32) {
    %c0_i32 = arith.constant 0 : i32
    %c0_i32_0 = arith.constant 0 : i32
    %c0_i32_1 = arith.constant 0 : i32
    return %c0_i32, %c0_i32_0 : i32, i32
  }
  func.func @transform_3(%arg0: i32, %arg1: i32, %arg2: i32) -> (i32, i32, i32) {
    %c0_i32 = arith.constant 0 : i32
    %c0_i32_0 = arith.constant 0 : i32
    return %arg0, %c0_i32, %arg2 : i32, i32, i32
  }
  func.func @transform_4(%arg0: i32, %arg1: i32, %arg2: i32) -> (i32, i32, i32) {
    %c0_i32 = arith.constant 0 : i32
    %c0_i32_0 = arith.constant 0 : i32
    return %arg0, %c0_i32, %arg2 : i32, i32, i32
  }
  func.func @transform_5(%arg0: i32, %arg1: i32, %arg2: i32) -> (i32, i32, i32) {
    %c0_i32 = arith.constant 0 : i32
    %c0_i32_0 = arith.constant 0 : i32
    %c0_i32_1 = arith.constant 0 : i32
    return %arg0, %c0_i32, %c0_i32_0 : i32, i32, i32
  }
}

</mosaic_0001>

<bundles_post_ra>
// kernel: tpu_custom_call.1
= control target key start
LH: loop header
LB: loop body
LE: loop exit
PB: predicated region body
PF: predicated region fallthrough
CT: control target
= control target key end

     0   :  { %s2213_s0 = inlined_call_operand.hbm [shape: f32[2,8,16], index: 0, kind: input, shape index: {}]   ;;  %s2214_s1 = inlined_call_operand.hbm [shape: f32[32,8], index: 1, kind: input, shape index: {}]   ;;  %s2215_s2 = inlined_call_operand.hbm [shape: f32[8,8], index: 2, kind: input, shape index: {}]   ;;  %s2216_s3 = inlined_call_operand.hbm [shape: s32[2,2,256], index: 3, kind: input, shape index: {}]   ;;  %s2217_s4 = inlined_call_operand.hbm [shape: f32[2,4,256], index: 4, kind: output, shape index: {0}]   ;;  %s2218_s5 = inlined_call_operand.hbm [shape: f32[2,32,16], index: 5, kind: output, shape index: {1}]  }
   0x1   :  { %2242 = sst [smem:[#allocation33_spill]] %s2213_s0 }
   0x2   :  { %2243 = sst [smem:[#allocation34_spill]] %s2214_s1 }
   0x3   :  { %2244 = sst [smem:[#allocation35_spill]] %s2215_s2 }
   0x4   :  { %2245 = sst [smem:[#allocation36_spill]] %s2217_s4 }
   0x5   :  { %2246 = sst [smem:[#allocation37_spill]] %s2218_s5 }
   0x6   :  { %11 = vsyncpa [#allocation7], 0 }
   0x7   :  { %13 = vsyncpa [#allocation7 + $0x1], 0 }
   0x8   :  { %14 = vsyncpa [#allocation10], 0 }
   0x9   :  { %15 = vsyncpa [#allocation13], 0 }
   0xa   :  { %17 = vsyncpa [#allocation13 + $0x1], 0 }
   0xb   :  { %18 = vsyncpa [#allocation8], 0 }
   0xc   :  { %20 = vsyncpa [#allocation8 + $0x1], 0 }
   0xd   :  { %21 = vsyncpa [#allocation16], 0 }
   0xe   :  { %23 = vsyncpa [#allocation16 + $0x1], 0  ;;  %s1735_s18 = smov 0   ;;  %s1737_s19 = smov 0  }
   0xf   :  { %s1739_s20 = smov 0   ;;  %s1741_s21 = smov 0  }
  0x10   :  { %s1743_s22 = smov 0   ;;  %s1745_s23 = smov 0  }
  0x11   :  { %s1747_s24 = smov 0   ;;  %s1749_s25 = smov 0  }
  0x12   :  { %s1751_s26 = smov 0   ;;  %s1753_s27 = smov 0  }
  0x13   :  { %s1755_s28 = smov 0   ;;  %s1757_s29 = smov 0  }
  0x14   :  { %s1759_s30 = smov 0  }
  0x15 LB: > { %2247 = sst [smem:[#allocation22_spill]] %s1631_s18  ;;  %s2219_s6 = sadd.s32 4294967295, %s1679_s30   ;;  %s1679_s30 = sphi %s1759_s30, %s29_s30   ;;  %s1675_s29 = sphi %s1757_s29, %s2319_s29   ;;  %s1671_s28 = sphi %s1755_s28, %s2306_s28   ;;  %s1667_s27 = sphi %s1753_s27, %s2318_s27   ;;  %s1663_s26 = sphi %s1751_s26, %s2317_s26   ;;  %s1659_s25 = sphi %s1749_s25, %s2316_s25   ;;  %s1655_s24 = sphi %s1747_s24, %s2315_s24   ;;  %s1651_s23 = sphi %s1745_s23, %s2314_s23   ;;  %s1647_s22 = sphi %s1743_s22, %s2313_s22   ;;  %s1643_s21 = sphi %s1741_s21, %s2312_s21   ;;  %s1639_s20 = sphi %s1739_s20, %s2311_s20   ;;  %s1635_s19 = sphi %s1737_s19, %s2310_s19   ;;  %s1631_s18 = sphi %s1735_s18, %s2309_s18  }
  0x16   : > { %2248 = sst [smem:[#allocation23_spill]] %s1643_s21  ;;  %p1087_p0 = scmp.ge.s32.totalorder %s1679_s30, 1 }
  0x17   : > { %2249 = sst [smem:[#allocation24_spill]] %s1659_s25  ;;  %p1804_p1 = scmp.eq.s32.totalorder %s2219_s6, 0 }
  0x18   : > { %2250 = sst [smem:[#allocation25_spill]] %s1663_s26  ;;  %p203_p2 = scmp.lt.s32.totalorder %s1679_s30, 9 }
  0x19   : > { %2251 = sst [smem:[#allocation26_spill]] %s1671_s28  ;;  %s1681_s9 = smov [#allocation9]  }
  0x1a   : > { %s2252_s7 = scalar_select %p1804_p1, 1, 0 }
  0x1b   : > { %p1809_p3 = pnand %p1087_p0, %p203_p2  ;;  %s215_s10 = sshll.u32 %s1681_s9, 4  ;;  %s216_s10 = int_to_ptr.vmem [resolvable:$true] %s215_s10 }
  0x1c   : > { %s1682_s12 = smov [#allocation11]   ;;  %s2255_s1 = sld [smem:[#allocation34_spill]] }
  0x1d   : > { %s2253_s8 = scalar_select %p1809_p3, 1, 0 }
  0x1e   : > { %p1223_p4 = pneg %p1809_p3  ;;  %s229_s13 = sshll.u32 %s1682_s12, 4  ;;  %s1821_s13 = int_to_ptr.vmem [resolvable:$true] %s229_s13 }
  0x20   : > { %p1817_p5 = pnand %p1223_p4, %p1804_p1 }
  0x22   : > { %s1385_s16 = scalar_lea.hbm %s2255_s1, 512  ;;  %p1387_p7 = pneg %p1817_p5 }
  0x23   : > { %p1386_p6 = scmp.ne.s32.totalorder %s2255_s1, %s1385_s16  ;;  %p1392_p10 = scmp.lt.u32.totalorder %s1385_s16, %s2255_s1 }
  0x25   : > { %p1388_p8 = pnand %p1387_p7, %p1386_p6 }
  0x27   : > { %p1389_p9 = pneg %p1388_p8 }
  0x29   : > { %p1394_p11 = pnand %p1392_p10, %p1389_p9 }
  0x2b   : > { %1397 = shalt.err (!%p1394_p11)
}
  0x2c   : > { %s1398_s12 = scalar_lea.vmem %s216_s10, 512  ;;  %p1406_p2 = scmp.lt.s32.totalorder %s216_s10, %s216_s10 }
  0x2d   : > { %p1399_p12 = scmp.ne.s32.totalorder %s216_s10, %s1398_s12  ;;  %p1407_p4 = scmp.lt.s32.totalorder %s1398_s12, %s1398_s12 }
  0x2f   : > { %p1401_p13 = pnand %p1399_p12, %p1387_p7  ;;  %p1408_p3 = por %p1407_p4, %p1406_p2 }
  0x31   : > { %p1402_p0 = pneg %p1401_p13 }
  0x33   : > { %p1409_p1 = pnand %p1408_p3, %p1402_p0 }
  0x35   : > { %1412 = shalt.err (!%p1409_p1)
}
  0x36   : > { %s1683_s14 = smov 128   ;;  %s1684_s15 = smov 8  }
  0x37   : > { %1226 = dma.hbm_to_vmem [thread:$0]  (!%p1817_p5), %s2255_s1, 512, %s216_s10, [#allocation10], %s1683_s14, %s1683_s14, %s1684_s15  }
  0x38   : > { %s2256_s2 = sld [smem:[#allocation35_spill]] }
  0x3e   : > { %s1413_s9 = scalar_lea.hbm %s2256_s2, 128 }
  0x3f   : > { %p1414_p6 = scmp.ne.s32.totalorder %s2256_s2, %s1413_s9  ;;  %p1420_p8 = scmp.lt.u32.totalorder %s1413_s9, %s2256_s2 }
  0x41   : > { %p1416_p1 = pnand %p1414_p6, %p1387_p7 }
  0x43   : > { %p1417_p3 = pneg %p1416_p1 }
  0x45   : > { %p1422_p9 = pnand %p1420_p8, %p1417_p3 }
  0x47   : > { %1425 = shalt.err (!%p1422_p9)
}
  0x48   : > { %s1426_s10 = scalar_lea.vmem %s1821_s13, 128  ;;  %p1434_p13 = scmp.lt.s32.totalorder %s1821_s13, %s1821_s13 }
  0x49   : > { %p1427_p10 = scmp.ne.s32.totalorder %s1821_s13, %s1426_s10  ;;  %p1435_p0 = scmp.lt.s32.totalorder %s1426_s10, %s1426_s10 }
  0x4b   : > { %p1429_p11 = pnand %p1427_p10, %p1387_p7  ;;  %p1436_p2 = por %p1435_p0, %p1434_p13 }
  0x4d   : > { %p1430_p12 = pneg %p1429_p11 }
  0x4f   : > { %p1437_p4 = pnand %p1436_p2, %p1430_p12 }
  0x51   : > { %1440 = shalt.err (!%p1437_p4)
}
  0x52   : > { %1229 = dma.hbm_to_vmem [thread:$0]  (!%p1817_p5), %s2256_s2, 128, %s1821_s13, [#allocation10]  }
  0x53   : > { %s1086_s26 = sadd.s32 4294967294, %s1679_s30   ;;  %p62_p7 = scmp.ne.s32.totalorder %s1651_s23, %s1647_s22 }
  0x54   : > { %p2228_p6 = scmp.eq.s32.totalorder %s1679_s30, 0  ;;  %p68_p1 = scmp.ne.s32.totalorder %s1647_s22, %s1643_s21 }
  0x55   : > { %s2257_s15 = sadd.s32 4294967295, %s1679_s30   ;;  %p1884_p8 = scmp.eq.s32.totalorder %s1086_s26, 7 }
  0x56   : > { %p1880_p3 = scmp.eq.s32.totalorder %s2257_s15, 7  ;;  %p64_p5 = por %p2228_p6, %p62_p7 }
  0x57   : > { %s2259_s6 = scalar_select %p1884_p8, 1, 0 }
  0x58   : > { %p2260_p9 = scmp.ne.s32.totalorder %s2252_s7, 0  ;;  %p1898_p11 = por %p1880_p3, %p62_p7 }
  0x59   : > { %p1904_p12 = por %p1884_p8, %p68_p1  ;;  %p2227_p13 = scmp.lt.s32.totalorder %s1679_s30, 8 }
  0x5a   : > { %p1892_p10 = por %p2260_p9, %p68_p1  ;;  %s240_s9 = sand.u32 1, %s1651_s23  }
  0x5b   : > { %s2262_s16 = scalar_select %p1898_p11, 1, 0 }
  0x5c   : > { %s2261_s13 = scalar_select %p1892_p10, 1, 0 }
  0x5d   : > { %2263 = sst [smem:[#allocation27_spill]] %s2262_s16  ;;  %s1091_s12 = sshll.u32 %s240_s9, 3 }
  0x5e   : > { %s2264_s17 = scalar_select %p1904_p12, 1, 0 }
  0x5f   : > { %s1092_s10 = sshll.u32 %s1675_s29, 7  ;;  %s2266_s0 = sld [smem:[#allocation33_spill]] }
  0x60   : > { %2265 = sst [smem:[#allocation28_spill]] %s2264_s17  ;;  %s244_s15 = scalar_lea.vmem [#allocation6], %s1091_s12 }
  0x61   : > { %s251_s14 = sshll.u32 %s244_s15, 4  ;;  %p1920_p0 = pnand %p2227_p13, %p64_p5  ;;  %s1916_s14 = int_to_ptr.vmem [resolvable:$true] %s251_s14 }
  0x62   : > { %s241_s1 = scalar_lea.sflag [#allocation7], %s240_s9 }
  0x63   : > { %p1443_p4 = pneg %p1920_p0 }
  0x65   : > { %s1914_s26 = scalar_lea.hbm %s2266_s0, %s1092_s10  ;;  %s1446_s4 = scalar_lea.hbm %s2266_s0, 256 }
  0x66   : > { %s1441_s2 = scalar_lea.hbm %s1914_s26, 128  ;;  %p1447_p5 = scmp.lt.u32.totalorder %s1914_s26, %s2266_s0 }
  0x67   : > { %p1442_p2 = scmp.ne.s32.totalorder %s1914_s26, %s1441_s2  ;;  %p1448_p13 = scmp.lt.u32.totalorder %s1446_s4, %s1441_s2 }
  0x68   : > { %p1450_p12 = scmp.lt.u32.totalorder %s1441_s2, %s1914_s26 }
  0x69   : > { %p1444_p7 = pnand %p1443_p4, %p1442_p2  ;;  %p1449_p6 = por %p1448_p13, %p1447_p5 }
  0x6b   : > { %p1445_p1 = pneg %p1444_p7  ;;  %p1451_p11 = por %p1450_p12, %p1449_p6 }
  0x6d   : > { %p1452_p10 = pnand %p1451_p11, %p1445_p1 }
  0x6f   : > { %1455 = shalt.err (!%p1452_p10)
}
  0x70   : > { %s1456_s9 = scalar_lea.vmem %s1916_s14, 128  ;;  %s1685_s12 = smov [#allocation6]  }
  0x71   : > { %p1457_p2 = scmp.ne.s32.totalorder %s1916_s14, %s1456_s9  ;;  %s1461_s10 = sshll.u32 %s1685_s12, 4  ;;  %s1462_s10 = int_to_ptr.vmem [resolvable:$false] %s1461_s10 }
  0x72   : > { %s1463_s25 = scalar_lea.vmem %s1462_s10, 256  ;;  %p1464_p9 = scmp.lt.s32.totalorder %s1916_s14, %s1462_s10 }
  0x73   : > { %p1459_p7 = pnand %p1457_p2, %p1443_p4  ;;  %p1465_p13 = scmp.lt.s32.totalorder %s1463_s25, %s1456_s9 }
  0x75   : > { %p1460_p8 = pneg %p1459_p7  ;;  %p1466_p5 = por %p1465_p13, %p1464_p9 }
  0x77   : > { %p1467_p6 = pnand %p1466_p5, %p1460_p8 }
  0x79   : > { %1470 = shalt.err (!%p1467_p6)
}
  0x7a   : > { %1233 = dma.hbm_to_vmem [thread:$0]  (!%p1920_p0), %s1914_s26, 128, %s1916_s14, %s241_s1  }
  0x7b   : > { %s41_s2 = sadd.s32 1, %s1667_s27  ;;  %s44_s11 = sadd.s32 1, %s1671_s28 }
  0x7c   : > { %p42_p8 = scmp.ge.s32.totalorder %s41_s2, 2  ;;  %s125_s4 = sadd.s32 1, %s1639_s20 }
  0x7d   : > { %p132_p9 = scmp.ne.s32.totalorder %s1639_s20, %s1635_s19  ;;  %p2269_p10 = scmp.eq.s32.totalorder %s1679_s30, 0 }
  0x7e   : > { %s2321_s2 = smov (%p42_p8, %s41_s2), 0  ;;  %s2323_s11 = smov (!%p42_p8, %s44_s11), %s1671_s28 }
  0x7f   : > { %2268 = sst [smem:[#allocation29_spill]] %s2321_s2  ;;  %s121_s15 = ssub.s32 %s1667_s27, %s2321_s2 }
  0x80   : > { %p1961_p11 = por %p132_p9, %p2269_p10  ;;  %p46_p12 = scmp.ge.s32.totalorder %s2323_s11, 2 }
  0x81   : > { %p138_p0 = scmp.ne.s32.totalorder %s1635_s19, %s1631_s18  ;;  %p1969_p4 = por %p1880_p3, %p132_p9 }
  0x82   : > { %s258_s14 = sand.u32 1, %s1639_s20   ;;  %s2325_s11 = smov (%p46_p12, %s2323_s11), 0 }
  0x83   : > { %s2271_s1 = scalar_select %p1969_p4, 1, 0 }
  0x84   : > { %2272 = sst [smem:[#allocation30_spill]] %s2325_s11  ;;  %s2273_s26 = sadd.s32 1, %s1675_s29 }
  0x85   : > { %s2327_s26 = smov (!%p46_p12, %s2273_s26), %s1675_s29  ;;  %p2274_p1 = scmp.ne.s32.totalorder %s2252_s7, 0 }
  0x86   : > { %p2276_p7 = scmp.ne.s32.totalorder %s2259_s6, 0  ;;  %p50_p3 = scmp.ge.s32.totalorder %s2327_s26, 2 }
  0x87   : > { %p1981_p2 = por %p138_p0, %p2274_p1  ;;  %s1093_s10 = sshll.u32 %s258_s14, 1 }
  0x88   : > { %p1987_p13 = por %p2276_p7, %p138_p0  ;;  %s1094_s25 = sshll.u32 %s1675_s29, 1 }
  0x89   : > { %s2329_s26 = smov (%p50_p3, %s2327_s26), 0  ;;  %s267_s0 = sadd.s32 %s1667_s27, %s1094_s25 }
  0x8a   : > { %s2277_s5 = scalar_select %p1987_p13, 1, 0 }
  0x8b   : > { %2279 = sst [smem:[#allocation32_spill]] %s2329_s26  ;;  %s52_s11 = ssub.s32 %s1675_s29, %s2329_s26 }
  0x8c   : > { %2278 = sst [smem:[#allocation31_spill]] %s2277_s5  ;;  %s1095_s2 = sshll.u32 %s267_s0, 5 }
  0x8d   : > { %p53_p5 = scmp.eq.s32.totalorder %s52_s11, 0  ;;  %s122_s28 = sor.u32 %s121_s15, %s52_s11 }
  0x8e   : > { %p123_p6 = scmp.eq.s32.totalorder %s122_s28, 0  ;;  %s2000_s21 = scalar_lea.hbm %s2216_s3, %s1095_s2 }
  0x8f   : > { %s2280_s5 = sadd.s32 1, %s1651_s23  ;;  %s262_s25 = scalar_lea.vmem [#allocation12], %s1093_s10 }
  0x90   : > { %s2005_s18 = scalar_select %p53_p5, %s1651_s23, %s2280_s5  }
  0x91   : > { %s2008_s16 = scalar_select %p123_p6, %s1639_s20, %s125_s4  }
  0x92   : > { %s271_s26 = sshll.u32 %s262_s25, 4  ;;  %p2281_p8 = scmp.lt.s32.totalorder %s1679_s30, 8  ;;  %s2018_s26 = int_to_ptr.vmem [resolvable:$true] %s271_s26 }
  0x93   : > { %s259_s28 = scalar_lea.sflag [#allocation13], %s258_s14  ;;  %s1471_s17 = scalar_lea.hbm %s2000_s21, 32 }
  0x94   : > { %p2014_p9 = pnand %p2281_p8, %p1961_p11  ;;  %p1472_p10 = scmp.ne.s32.totalorder %s2000_s21, %s1471_s17 }
  0x95   : > { %s1476_s4 = scalar_lea.hbm %s2216_s3, 128  ;;  %p1477_p11 = scmp.lt.u32.totalorder %s2000_s21, %s2216_s3 }
  0x96   : > { %p1473_p12 = pneg %p2014_p9  ;;  %p1478_p7 = scmp.lt.u32.totalorder %s1476_s4, %s1471_s17 }
  0x97   : > { %p1480_p5 = scmp.lt.u32.totalorder %s1471_s17, %s2000_s21 }
  0x98   : > { %p1474_p0 = pnand %p1473_p12, %p1472_p10  ;;  %p1479_p3 = por %p1478_p7, %p1477_p11 }
  0x9a   : > { %p1475_p1 = pneg %p1474_p0  ;;  %p1481_p6 = por %p1480_p5, %p1479_p3 }
  0x9c   : > { %p1482_p8 = pnand %p1481_p6, %p1475_p1 }
  0x9e   : > { %1485 = shalt.err (!%p1482_p8)
}
  0x9f   : > { %s1486_s14 = scalar_lea.vmem %s2018_s26, 32  ;;  %s1686_s5 = smov [#allocation12]  }
  0xa0   : > { %p1487_p10 = scmp.ne.s32.totalorder %s2018_s26, %s1486_s14  ;;  %s1491_s10 = sshll.u32 %s1686_s5, 4  ;;  %s1492_s10 = int_to_ptr.vmem [resolvable:$false] %s1491_s10 }
  0xa1   : > { %s1493_s6 = scalar_lea.vmem %s1492_s10, 64  ;;  %p1494_p4 = scmp.lt.s32.totalorder %s2018_s26, %s1492_s10 }
  0xa2   : > { %p1489_p0 = pnand %p1487_p10, %p1473_p12  ;;  %p1495_p11 = scmp.lt.s32.totalorder %s1493_s6, %s1486_s14 }
  0xa4   : > { %p1490_p13 = pneg %p1489_p0  ;;  %p1496_p7 = por %p1495_p11, %p1494_p4 }
  0xa6   : > { %p1497_p3 = pnand %p1496_p7, %p1490_p13 }
  0xa8   : > { %1500 = shalt.err (!%p1497_p3)
}
  0xa9   : > { %1236 = dma.hbm_to_vmem [thread:$0]  (!%p2014_p9), %s2000_s21, 32, %s2018_s26, %s259_s28  }
  0xaa   : > { %p2283_p1 = scmp.ne.s32.totalorder %s2253_s8, 0 }
  0xab   : > { %s2048_s25 = sand.u32 (!%p2283_p1), 1, %s1647_s22   ;;  %p2284_p4 = scmp.ne.s32.totalorder (!%p2283_p1), %s2261_s13, 0 }
  0xac   : > { %280 = sbr.rel (%p2283_p1) target bundleno = 1584 (0x630), region = 36  ;;  %s1097_s17 = sshll.u32 (!%p2283_p1), %s2048_s25, 3 }
  0xad   : > { %s283_s2 = scalar_lea.sflag (!%p2283_p1), [#allocation7], %s2048_s25  ;;  %s286_s11 = scalar_lea.vmem (!%p2283_p1), [#allocation6], %s1097_s17 }
  0xb3   : > { %1610 = dma.done.wait (%p2284_p4), %s283_s2, 128  }
  0xb4   : > { %1612 = vsyncadd (%p2284_p4), %s283_s2, 4294967168  ;;  %p2285_p13 = scmp.ne.s32.totalorder %s2252_s7, 0 }
  0xb6   : > { %1614 = dma.done.wait (%p2285_p13), [#allocation10], 640  }
  0xb7   : > { %1616 = vsyncadd (%p2285_p13), [#allocation10], 4294966656  ;;  %s2061_s21 = sand.u32 1, %s1635_s19  }
  0xb8   : > { %s1100_s8 = sshll.u32 %s2061_s21, 1  ;;  %s300_s26 = scalar_lea.sflag [#allocation13], %s2061_s21 }
  0xb9   : > { %s2065_s0 = scalar_lea.vmem [#allocation12], %s1100_s8 }
  0xba   : > { %1618 = dma.done.wait (%p1981_p2), %s300_s26, 32  }
  0xbb   : > { %1620 = vsyncadd (%p1981_p2), %s300_s26, 4294967264  ;;  %s2286_s7 = sld [smem:[#allocation24_spill]]  ;;  %s1101_s13 = sshll.u32 %s2061_s21, 2 }
  0xbc   : > { %s1102_s28 = sshll.u32 %s2048_s25, 5  ;;  %s1103_s4 = sshll.u32 %s1655_s24, 7 }
  0xbd   : > { %p342_p12 = scmp.eq.s32.totalorder %s1655_s24, 0  ;;  %s2078_s15 = scalar_lea.vmem [#allocation14], %s1101_s13 }
  0xbe   : > { %s2080_s9 = scalar_lea.vmem [#allocation15], %s1102_s28 }
  0xc1   : > { %p341_p9 = scmp.eq.s32.totalorder %s2286_s7, 0 }
  0xc3   : > { %p343_p5 = pnand %p342_p12, %p341_p9 }
  0xc4   : > { %vm539_vm0 = vcmask (!%p343_p5), 125952   ;;  %v347_v0 = vld [vmem:[%s286_s11] sm:$0xff] (!%p343_p5)  ;;  %vm352_vm1 = vcmask (!%p343_p5), 64512   ;;  %v455_v1 = vld [vmem:[#allocation11] sm:$0xff] (!%p343_p5)  ;;  %v1687_v2 = vmov (!%p343_p5), 0.0   ;;  %vm1688_vm2 = vmmov (!%p343_p5), 0  }
  0xc5   : > { %346 = sbr.rel (%p343_p5) target bundleno = 530 (0x212), region = 56  ;;  %1165 = vmatprep.subr.mxu1 (!%p343_p5), %v1687_v2  ;;  %540 = vst.msk [vmem:[#allocation4] sm:$0xf] (!%p343_p5), %vm539_vm0, %v1687_v2  ;;  %1167 = vmatprep.mubr.msk.f32.mxu1 (!%p343_p5), %vm1688_vm2, %v1687_v2  ;;  %v348_v3 = vld [vmem:[#allocation9] sm:$0xff] (!%p343_p5)  ;;  %v349_v4 = vld [vmem:[#allocation9 + $0x8] sm:$0xff] (!%p343_p5)  ;;  %v350_v5 = vld [vmem:[#allocation9 + $0x10] sm:$0xff] (!%p343_p5) }
  0xc6   : > { %1166 = vmatpush3.msra.mxu1 (!%p343_p5), %v347_v0  ;;  %1157 = vmatprep.subr.mxu0 (!%p343_p5), %v347_v0  ;;  %v351_v6 = vld [vmem:[#allocation9 + $0x18] sm:$0xff] (!%p343_p5)  ;;  %vm537_vm3 = vcmask (!%p343_p5), 3072   ;;  %v1689_v7 = vmov (!%p343_p5), -1e+30   ;;  %vm450_vm4 = vcmask (!%p343_p5), 130048   ;;  %s1690_s12 = smov (!%p343_p5), 16  }
  0xc7   : > { %1168 = vmatmul.mubr.msk.f32.vlgmr.msra.gmra.mrb[0].mxu1 (!%p343_p5), %vm352_vm1, %v455_v1  ;;  %1158 = vmatpush3.msra.mxu0 (!%p343_p5), %v347_v0  ;;  %538 = vst.msk [vmem:[#allocation3] sm:$0xf] (!%p343_p5), %vm537_vm3, %v1689_v7  ;;  %vm535_vm5 = vcmask (!%p343_p5), 257024  }
  0xc8   : > { %1159 = vmatprep.mubr.msk.f32.mxu0 (!%p343_p5), %vm352_vm1, %v348_v3 }
  0xc9   : > { %1160 = vmatmul.mubr.msk.f32.vlgmr.msra.gmra.mrb[0].mxu0 (!%p343_p5), %vm352_vm1, %v349_v4 }
  0xca   : > { %1162 = vmatprep.mubr.msk.f32.mxu0 (!%p343_p5), %vm352_vm1, %v350_v5 }
  0xcd   : > { %1163 = vmatmul.mubr.msk.f32.gmra.mrb[2].mxu0 %vm352_vm1, %v351_v6 }
 0x19a   : > { %v525_v8 = vpop.f32.mrb[0].mxu1 }
 0x19b   : > { %v1169_v9 = vpop.f32.mrb[1].mxu1  ;;  %v530_v10 = vrot.slane %v525_v8, 4 }
 0x19c   : > { %v1161_v11 = vpop.f32.mrb[0].mxu0 }
 0x19d   : > { %531 = vrot.lane.b32.xlu0 %v530_v10, %s1690_s12  ;;  %452 = vst.msk [vmem:[%s2080_s9 + $0x8] sm:$0xff] %vm450_vm4, %v1161_v11  ;;  %v431_v12 = vpop.f32.mrb[1].mxu0 }
 0x19e   : > { %451 = vst.msk [vmem:[%s2080_s9] sm:$0xff] %vm450_vm4, %v431_v12 }
 0x1a0   : > { %v1164_v13 = vpop.f32.mrb[2].mxu0 }
 0x1a1   : > { %454 = vst.msk [vmem:[%s2080_s9 + $0x18] sm:$0xff] %vm450_vm4, %v1164_v13  ;;  %v441_v14 = vpop.f32.mrb[3].mxu0 }
 0x1a2   : > { %453 = vst.msk [vmem:[%s2080_s9 + $0x10] sm:$0xff] %vm450_vm4, %v441_v14 }
 0x20f   : > { %v532_v15 = vpop.permute.xlu0 %531 }
 0x210   : > { %v534_v16 = vsel %vm450_vm4, %v525_v8, %v532_v15 }
 0x211   : > { %536 = vst.msk [vmem:[#allocation2] sm:$0xf] %vm535_vm5, %v534_v16 }
 0x212 PF: > { %s2287_s14 = sld [smem:[#allocation24_spill]] }
 0x218   : > { %p1109_p2 = scmp.ne.s32.totalorder %s2287_s14, 0 }
 0x219   : > { %v545_v17 = vlaneseq (!%p1109_p2)  ;;  %v1691_v18 = vmov (!%p1109_p2), 0.0|0.0   ;;  %vm1692_vm6 = vmmov (!%p1109_p2), 0   ;;  %v1693_v20 = vmov (!%p1109_p2), 0.0   ;;  %v544_v21 = vld [vmem:[%s2065_s0] sm:$0x3] (!%p1109_p2)  ;;  %s657_s5 = sshra.s32 (!%p1109_p2), %s1103_s4, 7 }
 0x21a   : > { %543 = sbr.rel (%p1109_p2) target bundleno = 1272 (0x4f8), region = 60  ;;  %1195 = vmatprep.subr.bf16.mxu0 (!%p1109_p2), %v1691_v18  ;;  %1201 = vmatprep.subr.bf16.mxu1 (!%p1109_p2), %v1691_v18  ;;  %v1694_v30 = vmov (!%p1109_p2), 1.0|1.0   ;;  %v579_v31 = vld [vmem:[#allocation2] sm:$0xf] (!%p1109_p2)  ;;  %vm580_vm13 = vcmask (!%p1109_p2), 261120  }
 0x21b   : > { %v546_v19 = vshrl.u32 (!%p1109_p2), %v545_v17, 7  ;;  %1178 = vmatprep.mubr.msk.f32.mxu0 (!%p1109_p2), %vm1692_vm6, %v1693_v20  ;;  %1185 = vmatprep.mubr.msk.f32.mxu1 (!%p1109_p2), %vm1692_vm6, %v1693_v20  ;;  %s1119_s10 = sshll.u32 (!%p1109_p2), %s657_s5, 2  ;;  %vm663_vm15 = vcmask (!%p1109_p2), 1043456   ;;  %v1695_v37 = vmov (!%p1109_p2), 0   ;;  %v662_v38 = vld [vmem:[#allocation3] sm:$0xf] (!%p1109_p2) }
 0x21c   : > { %s660_s6 = scalar_lea.vmem (!%p1109_p2), [#allocation5], %s1119_s10  ;;  %1374 = vset.pattern.permute.xlu0 (!%p1109_p2), %v1695_v37  ;;  %1375 = vset.pattern.permute.xlu1 (!%p1109_p2), %v1695_v37  ;;  %vm759_vm0 = vcmask (!%p1109_p2), 3072   ;;  %v679_v48 = vld [vmem:[#allocation4] sm:$0xf] (!%p1109_p2)  ;;  %vm757_vm1 = vcmask (!%p1109_p2), 125952  }
 0x21d   : > { %v547_v22 = vadd.s32 (!%p1109_p2), 8, %v546_v19  ;;  %v552_v23 = vsub.s32 (!%p1109_p2), 0, %v546_v19  ;;  %v556_v24 = vsub.s32 (!%p1109_p2), 1, %v546_v19  ;;  %v548_v27 = vadd.s32 (!%p1109_p2), 16, %v546_v19 }
 0x21e   : > { %v549_v28 = vadd.s32 (!%p1109_p2), 24, %v546_v19 }
 0x21f   : > { %v553_v25 = vrot.slane (!%p1109_p2), %v544_v21, %v552_v23  ;;  %v557_v26 = vrot.slane (!%p1109_p2), %v544_v21, %v556_v24 }
 0x221   : > { %vm567_vm7 = vcmp.eq.s32.totalorder %v546_v19, %v553_v25  ;;  %vm568_vm8 = vcmp.eq.s32.totalorder %v547_v22, %v553_v25  ;;  %v562_v29 = vadd.s32 16, %v557_v26 }
 0x222   : > { %vm1196_vm9 = vmpackc.low %vm568_vm8, %vm567_vm7 }
 0x223   : > { %1197 = vmatpush3.bf16.msk.msra.mxu0 %vm1196_vm9, %v1694_v30  ;;  %vm569_vm10 = vcmp.eq.s32.totalorder %v548_v27, %v562_v29  ;;  %vm570_vm11 = vcmp.eq.s32.totalorder %v549_v28, %v562_v29 }
 0x224   : > { %1198 = vmatprep.subr.bf16.mxu0 %v1691_v18  ;;  %vm1199_vm12 = vmpackc.low %vm570_vm11, %vm569_vm10 }
 0x225   : > { %1203 = vmatpush3.bf16.xpose.msk.msra.mxu1 %vm1199_vm12, %v1694_v30 }
 0x227   : > { %1200 = vmatpush3.bf16.msk.msra.mxu0 %vm1199_vm12, %v1694_v30 }
 0x22a   : > { %1179 = vmatmul.mubr.msk.f32.vlgmr.msra.gmra.mrb[0].mxu0 %vm580_vm13, %v579_v31 }
 0x2fd   : > { %v650_v32 = vpop.f32.mrb[0].mxu0 }
 0x2fe   : > { %vm654_vm14 = vcmp.gt.f32.partialorder %v650_v32, 0.0  ;;  %v655_v33 = vmul.f32 0.2, %v650_v32  ;;  %v1180_v34 = vpop.f32.mrb[1].mxu0 }
 0x300   : > { %v656_v35 = vsel %vm654_vm14, %v650_v32, %v655_v33 }
 0x301   : > { %v664_v36 = vsel %vm663_vm15, %v656_v35, -inf  ;;  %661 = vst [vmem:[%s660_s6] sm:$0xf] %v656_v35 }
 0x302   : > { %665 = vmax.xlane.f32.xlu0 %v664_v36 }
 0x38f   : > { %v666_v39 = vpop.xlane.xlu0 %665 }
 0x390   : > { %v667_v40 = vmax.f32 %v662_v38, %v666_v39 }
 0x392   : > { %v668_v41 = vsub.f32 %v662_v38, %v667_v40  ;;  %760 = vst.msk [vmem:[#allocation3] sm:$0xf] %vm759_vm0, %v667_v40  ;;  %673 = vperm.xlu0 %1374, %v667_v40  }
 0x394   : > { %v669_v42 = vmul.f32 1.442695, %v668_v41 }
 0x396   : > { %1376 = vpow2.f32 %v669_v42 }
 0x3a0   : > { %v1377_v43 = vpop.eup %1376 }
 0x3a1   : > { %682 = vperm.xlu1 %1375, %v1377_v43  }
 0x411   : > { %v674_v44 = vpop.permute.xlu0 %673 }
 0x412   : > { %v676_v45 = vsub.f32 %v656_v35, %v674_v44 }
 0x414   : > { %v677_v46 = vmul.f32 1.442695, %v676_v45 }
 0x416   : > { %1378 = vpow2.f32 %v677_v46 }
 0x420   : > { %v1379_v47 = vpop.eup %1378  ;;  %v683_v49 = vpop.permute.xlu1 %682 }
 0x421   : > { %1186 = vmatmul.mubr.f32.vlgmr.msra.gmra.mrb[0].mxu1 %v1379_v47  ;;  %v685_v50 = vmul.f32 %v683_v49, %v679_v48 }
 0x4f4   : > { %v752_v51 = vpop.f32.mrb[0].mxu1 }
 0x4f5   : > { %v756_v52 = vadd.f32 %v752_v51, %v685_v50  ;;  %v1187_v53 = vpop.f32.mrb[1].mxu1 }
 0x4f7   : > { %758 = vst.msk [vmem:[#allocation4] sm:$0xf] %vm757_vm1, %v756_v52 }
 0x4f8 PF: > { %s2288_s17 = sld [smem:[#allocation24_spill]] }
 0x4fe   : > { %p761_p6 = scmp.eq.s32.totalorder %s2288_s17, 1 }
 0x500   : > { %p762_p8 = pnand %p761_p6, %p342_p12 }
 0x501   : > { %v766_v54 = vld [vmem:[#allocation4] sm:$0xf] (!%p762_p8)  ;;  %vm769_vm2 = vcmask (!%p762_p8), 125952  }
 0x502   : > { %765 = sbr.rel (%p762_p8) target bundleno = 1296 (0x510), region = 64  ;;  %v767_v55 = vadd.f32 (!%p762_p8), 1e-16, %v766_v54 }
 0x504   : > { %1380 = vrcp.f32 (!%p762_p8), %v767_v55 }
 0x50e   : > { %v1381_v56 = vpop.eup %1380 }
 0x50f   : > { %770 = vst.msk [vmem:[#allocation4] sm:$0xf] %vm769_vm2, %v1381_v56 }
 0x510 PF: > { %s2289_s2 = sld [smem:[#allocation24_spill]] }
 0x516   : > { %p1122_p10 = scmp.ne.s32.totalorder %s2289_s2, 1 }
 0x517   : > { %v775_v57 = vlaneseq (!%p1122_p10)  ;;  %v1696_v58 = vmov (!%p1122_p10), 0.0|0.0   ;;  %v1123_v59 = vld [vmem:[%s2065_s0 + $0x1] ss:$0 sm:$0xff] (!%p1122_p10)  ;;  %vm1697_vm3 = vmmov (!%p1122_p10), 0   ;;  %v1698_v61 = vmov (!%p1122_p10), 0.0   ;;  %s788_s11 = sshra.s32 (!%p1122_p10), %s1103_s4, 7 }
 0x518   : > { %773 = sbr.rel (%p1122_p10) target bundleno = 1529 (0x5f9), region = 68  ;;  %1204 = vmatprep.subr.bf16.mxu0 (!%p1122_p10), %v1696_v58  ;;  %1192 = vmatprep.mubr.msk.f32.mxu0 (!%p1122_p10), %vm1697_vm3, %v1698_v61  ;;  %v1699_v62 = vmov (!%p1122_p10), 0   ;;  %v793_v63 = vld [vmem:[#allocation3] sm:$0xf] (!%p1122_p10)  ;;  %v1700_v1 = vmov (!%p1122_p10), 1.0|1.0  }
 0x519   : > { %v776_v60 = vshrl.u32 (!%p1122_p10), %v775_v57, 7  ;;  %1382 = vset.pattern.permute.xlu0 (!%p1122_p10), %v1699_v62  ;;  %v802_v2 = vld [vmem:[#allocation4] sm:$0xf] (!%p1122_p10)  ;;  %vm803_vm7 = vcmask (!%p1122_p10), 130048   ;;  %s1126_s8 = sshll.u32 (!%p1122_p10), %s788_s11, 2 }
 0x51a   : > { %796 = vperm.xlu0 (!%p1122_p10), %1382, %v793_v63   ;;  %s791_s26 = scalar_lea.vmem (!%p1122_p10), [#allocation5], %s1126_s8 }
 0x51b   : > { %v777_v0 = vadd.s32 (!%p1122_p10), 8, %v776_v60  ;;  %vm782_vm4 = vcmp.eq.s32.totalorder (!%p1122_p10), %v776_v60, %v1123_v59  ;;  %v792_v4 = vld [vmem:[%s791_s26] sm:$0xf] (!%p1122_p10) }
 0x51d   : > { %vm783_vm5 = vcmp.eq.s32.totalorder (!%p1122_p10), %v777_v0, %v1123_v59 }
 0x51e   : > { %vm1205_vm6 = vmpackc.low (!%p1122_p10), %vm783_vm5, %vm782_vm4 }
 0x51f   : > { %1206 = vmatpush3.bf16.msk.msra.mxu0 %vm1205_vm6, %v1700_v1 }
 0x522   : > { %1193 = vmatmul.mubr.msk.f32.vlgmr.msra.gmra.mrb[0].mxu0 %vm803_vm7, %v802_v2 }
 0x599   : > { %v797_v3 = vpop.permute.xlu0 %796 }
 0x59a   : > { %v799_v5 = vsub.f32 %v792_v4, %v797_v3 }
 0x59c   : > { %v800_v6 = vmul.f32 1.442695, %v799_v5 }
 0x59e   : > { %1383 = vpow2.f32 %v800_v6 }
 0x5a8   : > { %v1384_v7 = vpop.eup %1383 }
 0x5f5   : > { %v873_v8 = vpop.f32.mrb[0].mxu0 }
 0x5f6   : > { %v877_v9 = vmul.f32 %v1384_v7, %v873_v8  ;;  %v1194_v10 = vpop.f32.mrb[1].mxu0 }
 0x5f8   : > { %878 = vst [vmem:[%s2078_s15] sm:$0xf] %v877_v9 }
 0x5f9 PF: > { %s2290_s0 = sld [smem:[#allocation25_spill]]  ;;  %s900_s28 = sshll.u32 %s2078_s15, 4  ;;  %s2106_s28 = int_to_ptr.vmem [resolvable:$true] %s900_s28 }
 0x5fa   : > { %s2291_s5 = sld [smem:[#allocation36_spill]]  ;;  %s880_s6 = scalar_lea.sflag [#allocation8], %s2061_s21 }
 0x5fb   : > { %s1501_s17 = scalar_lea.vmem %s2106_s28, 64  ;;  %p2292_p11 = scmp.ne.s32.totalorder %s2271_s1, 0 }
 0x5fc   : > { %p1502_p0 = scmp.ne.s32.totalorder %s2106_s28, %s1501_s17  ;;  %s1701_s2 = smov [#allocation14]  }
 0x5fd   : > { %s1505_s11 = sshll.u32 %s1701_s2, 4  ;;  %s1506_s11 = int_to_ptr.vmem [resolvable:$false] %s1505_s11 }
 0x5fe   : > { %p1503_p7 = pnand %p1502_p0, %p2292_p11  ;;  %p1508_p1 = scmp.lt.s32.totalorder %s2106_s28, %s1506_s11 }
 0x5ff   : > { %s1132_s7 = sshll.u32 %s2290_s0, 1 }
 0x600   : > { %s896_s13 = sadd.s32 %s1655_s24, %s1132_s7  ;;  %p1504_p3 = pneg %p1503_p7 }
 0x601   : > { %s1133_s4 = sshll.u32 %s896_s13, 6  ;;  %s1507_s24 = scalar_lea.vmem %s1506_s11, 128 }
 0x602   : > { %s898_s10 = scalar_lea.hbm %s2291_s5, %s1133_s4  ;;  %p1509_p4 = scmp.lt.s32.totalorder %s1507_s24, %s1501_s17 }
 0x604   : > { %p1510_p13 = por %p1509_p4, %p1508_p1 }
 0x606   : > { %p1511_p9 = pnand %p1510_p13, %p1504_p3 }
 0x608   : > { %1514 = shalt.err (!%p1511_p9)
}
 0x609   : > { %s1515_s15 = scalar_lea.hbm %s898_s10, 64  ;;  %s1519_s26 = scalar_lea.hbm %s2291_s5, 256 }
 0x60a   : > { %p1516_p12 = scmp.ne.s32.totalorder %s898_s10, %s1515_s15  ;;  %p1520_p6 = scmp.lt.u32.totalorder %s898_s10, %s2291_s5 }
 0x60b   : > { %p1521_p8 = scmp.lt.u32.totalorder %s1519_s26, %s1515_s15  ;;  %p1523_p0 = scmp.lt.u32.totalorder %s1515_s15, %s898_s10 }
 0x60c   : > { %p1517_p5 = pnand %p1516_p12, %p2292_p11 }
 0x60d   : > { %p1522_p10 = por %p1521_p8, %p1520_p6 }
 0x60e   : > { %p1518_p2 = pneg %p1517_p5 }
 0x60f   : > { %p1524_p7 = por %p1523_p0, %p1522_p10 }
 0x611   : > { %p1525_p3 = pnand %p1524_p7, %p1518_p2 }
 0x613   : > { %1528 = shalt.err (!%p1525_p3)
}
 0x614   : > { %s2293_s4 = sld [smem:[#allocation27_spill]]  ;;  %s1138_s12 = sshll.u32 %s2290_s0, 9 }
 0x615   : > { %1219 = dma.vmem_to_hbm [thread:$0]  (%p2292_p11), %s2106_s28, 64, %s898_s10, %s880_s6  }
 0x616   : > { %s913_s14 = sshll.u32 %s2080_s9, 4  ;;  %s2294_s11 = sld [smem:[#allocation37_spill]]  ;;  %s2135_s14 = int_to_ptr.vmem [resolvable:$true] %s913_s14 }
 0x617   : > { %s885_s15 = scalar_lea.sflag [#allocation16], %s2048_s25  ;;  %s1529_s1 = scalar_lea.vmem %s2135_s14, 512 }
 0x618   : > { %p1530_p1 = scmp.ne.s32.totalorder %s2135_s14, %s1529_s1  ;;  %s1702_s21 = smov [#allocation15]  }
 0x619   : > { %s1533_s28 = sshll.u32 %s1702_s21, 4  ;;  %s1534_s28 = int_to_ptr.vmem [resolvable:$false] %s1533_s28 }
 0x61a   : > { %p2295_p4 = scmp.ne.s32.totalorder %s2293_s4, 0  ;;  %s1535_s9 = scalar_lea.vmem %s1534_s28, 1024 }
 0x61b   : > { %p1536_p11 = scmp.lt.s32.totalorder %s2135_s14, %s1534_s28  ;;  %p1537_p12 = scmp.lt.s32.totalorder %s1535_s9, %s1529_s1 }
 0x61c   : > { %s2133_s24 = scalar_lea.hbm %s2294_s11, %s1138_s12  ;;  %p1531_p13 = pnand %p1530_p1, %p2295_p4 }
 0x61d   : > { %p1538_p5 = por %p1537_p12, %p1536_p11 }
 0x61e   : > { %p1532_p9 = pneg %p1531_p13 }
 0x620   : > { %p1539_p2 = pnand %p1538_p5, %p1532_p9 }
 0x622   : > { %1542 = shalt.err (!%p1539_p2)
}
 0x623   : > { %s1543_s0 = scalar_lea.hbm %s2133_s24, 512  ;;  %s1547_s8 = scalar_lea.hbm %s2294_s11, 1024 }
 0x624   : > { %p1544_p6 = scmp.ne.s32.totalorder %s2133_s24, %s1543_s0  ;;  %p1548_p0 = scmp.lt.u32.totalorder %s2133_s24, %s2294_s11 }
 0x625   : > { %p1549_p7 = scmp.lt.u32.totalorder %s1547_s8, %s1543_s0  ;;  %p1551_p1 = scmp.lt.u32.totalorder %s1543_s0, %s2133_s24 }
 0x626   : > { %p1545_p8 = pnand %p1544_p6, %p2295_p4 }
 0x627   : > { %p1550_p3 = por %p1549_p7, %p1548_p0 }
 0x628   : > { %p1546_p10 = pneg %p1545_p8 }
 0x629   : > { %p1552_p13 = por %p1551_p1, %p1550_p3 }
 0x62b   : > { %p1553_p9 = pnand %p1552_p13, %p1546_p10 }
 0x62d   : > { %1556 = shalt.err (!%p1553_p9)
}
 0x62e   : > { %s1703_s13 = smov 128   ;;  %s1704_s12 = smov 8  }
 0x62f   : > { %1220 = dma.vmem_to_hbm [thread:$0]  (%p2295_p4), %s2135_s14, 512, %s2133_s24, %s885_s15, %s1703_s13, %s1703_s13, %s1704_s12  }
 0x630 PF: > { %s2296_s17 = sld [smem:[#allocation22_spill]]  ;;  %s2297_s2 = sld [smem:[#allocation31_spill]] }
 0x631   : > { %p1249_p11 = scmp.ge.s32.totalorder %s1679_s30, 2 }
 0x636   : > { %s928_s1 = sand.u32 1, %s2296_s17   ;;  %p2298_p12 = scmp.ne.s32.totalorder %s2297_s2, 0 }
 0x637   : > { %s929_s21 = scalar_lea.sflag [#allocation8], %s928_s1 }
 0x638   : > { %p1238_p5 = pnand %p1249_p11, %p2298_p12 }
 0x63a   : > { %1622 = dma.done.wait (!%p1238_p5), %s929_s21, 64  }
 0x63b   : > { %1624 = vsyncadd (!%p1238_p5), %s929_s21, 4294967232  ;;  %s2299_s28 = sld [smem:[#allocation23_spill]]  ;;  %s2300_s9 = sld [smem:[#allocation28_spill]] }
 0x641   : > { %s937_s0 = sand.u32 1, %s2299_s28   ;;  %p2301_p2 = scmp.ne.s32.totalorder %s2300_s9, 0 }
 0x642   : > { %s938_s10 = scalar_lea.sflag [#allocation16], %s937_s0 }
 0x643   : > { %p1241_p6 = pnand %p1249_p11, %p2301_p2 }
 0x645   : > { %1626 = dma.done.wait (!%p1241_p6), %s938_s10, 512  }
 0x646   : > { %1628 = vsyncadd (!%p1241_p6), %s938_s10, 4294966784  ;;  %s29_s30 = sadd.s32 1, %s1679_s30   ;;  %s2303_s4 = smov %s2005_s18 }
 0x647   : > { %p2169_p4 = scmp.ge.s32.totalorder %s29_s30, 10   ;;  %s2304_s14 = sld [smem:[#allocation26_spill]] }
 0x648   : > { %s2305_s15 = sld [smem:[#allocation29_spill]]  ;;  %s2306_s28 = sld [smem:[#allocation30_spill]] }
 0x649   : > { %s2307_s6 = sld [smem:[#allocation32_spill]]  ;;  %s2309_s18 = smov %s1635_s19 }
 0x64a   : > { %s2310_s19 = smov %s1639_s20  ;;  %s2311_s20 = smov %s2008_s16 }
 0x64b   : > { %s2312_s21 = smov %s1647_s22  ;;  %s2313_s22 = smov %s1651_s23 }
 0x64c   : > { %s2314_s23 = smov %s2303_s4  ;;  %s2315_s24 = smov %s1667_s27 }
 0x64d   : > { %s2316_s25 = smov %s2304_s14  ;;  %s2317_s26 = smov %s1675_s29 }
 0x64e   : > { %s2318_s27 = smov %s2305_s15  ;;  %28 = sbr.rel (!%p2169_p4) target bundleno = 21 (0x15), region = 137 }
 0x64f   : > { %s2319_s29 = smov %s2307_s6 }
 0x655   :  { %943 = vsyncpa [#allocation7], 1 }
 0x656   :  { %945 = vsyncpa [#allocation7 + $0x1], 1 }
 0x657   :  { %946 = vsyncpa [#allocation10], 1 }
 0x658   :  { %947 = vsyncpa [#allocation13], 1 }
 0x659   :  { %949 = vsyncpa [#allocation13 + $0x1], 1 }
 0x65a   :  { %950 = vsyncpa [#allocation8], 1 }
 0x65b   :  { %952 = vsyncpa [#allocation8 + $0x1], 1 }
 0x65c   :  { %953 = vsyncpa [#allocation16], 1 }
 0x65d   :  { %955 = vsyncpa [#allocation16 + $0x1], 1 }

</bundles_post_ra>
